<compile_context>
chip_gen: v6e
topology: v6e:2x2x1
jax: 0.10.0
libtpu: 0.0.40
codegen_flags: <defaults>
</compile_context>

<pallas_src>
import functools
from typing import Any, NamedTuple, Tuple

import numpy as np
import jax
import jax.numpy as jnp
from jax.experimental import pallas as pl
from jax.experimental.pallas import tpu as pltpu


LANE = 128   # feature dims are zero-padded to a multiple of the lane width


def _round_up(n, m):
    return (n + m - 1) // m * m


class EncoderParams(NamedTuple):
    w_packed: jax.Array            # (sum_i in_i_p, max_out_p)  compute dtype
    b_packed: jax.Array            # (n_layers, max_out_p)      float32
    dims: Tuple[int, ...]          # (d0, d1, ..., dL) original layer widths
    dims_p: Tuple[int, ...]        # lane-padded widths
    row_offsets: Tuple[int, ...]   # row offset of layer i inside w_packed
    compute_dtype: Any


def prepare_encoder_params(weights, biases, compute_dtype=None):
    """One-time prep (hoisted out of the forward): transpose nn.Linear
    (out,in) weights to (in,out), zero-pad to lane multiples, and pack all
    layers into a single weight buffer + a single f32 bias buffer."""
    n_layers = len(weights)
    assert n_layers >= 1 and n_layers == len(biases)
    in_dim = int(weights[0].shape[1])
    dims = (in_dim,) + tuple(int(w.shape[0]) for w in weights)
    dims_p = tuple(_round_up(d, LANE) for d in dims)

    w_dtype = jnp.asarray(weights[0]).dtype
    if compute_dtype is None:
        # MXU is bf16-native on v5e/v6e/v7x; accumulation stays f32 in-kernel.
        compute_dtype = jnp.bfloat16 if w_dtype == jnp.float32 else w_dtype
    cdt = jnp.dtype(compute_dtype)

    max_out_p = max(dims_p[1:])
    row_offsets, acc = [], 0
    for d in dims_p[:-1]:
        row_offsets.append(acc)
        acc += d
    total_rows = acc

    w_packed = jnp.zeros((total_rows, max_out_p), cdt)
    b_packed = jnp.zeros((n_layers, max_out_p), jnp.float32)
    for i, (w, b) in enumerate(zip(weights, biases)):
        di, do = dims[i], dims[i + 1]
        wt = jnp.asarray(w, cdt).T                                  # (in_i, out_i)
        w_packed = w_packed.at[row_offsets[i]:row_offsets[i] + di, :do].set(wt)
        b_packed = b_packed.at[i, :do].set(jnp.asarray(b, jnp.float32))

    return EncoderParams(w_packed, b_packed, dims, dims_p,
                         tuple(row_offsets), cdt)


def _encoder_kernel(n_layers, dims_p, row_offsets, x_ref, w_ref, b_ref, out_ref):
    """Fused MLP on one batch tile.

    x_ref:  (bt, d_in_p)            compute dtype
    w_ref:  (sum in_i_p, max_out_p) compute dtype, all layers packed by rows
    b_ref:  (n_layers, max_out_p)   f32
    Matmuls feed the MXU in the storage dtype and accumulate in f32; ReLU is
    applied on the f32 accumulator between layers, none after the last
    (matches nn.Sequential(*inside[:-1])).
    """
    cdt = x_ref.dtype
    h = x_ref[...]
    for i in range(n_layers):
        di, do = dims_p[i], dims_p[i + 1]
        off = row_offsets[i]
        w = w_ref[off:off + di, :do]          # tile-aligned static slice
        b = b_ref[i:i + 1, :do]               # (1, do) f32
        acc = jnp.dot(h, w, preferred_element_type=jnp.float32) + b
        if i < n_layers - 1:
            h = jnp.maximum(acc, 0.0).astype(cdt)
        else:
            out_ref[...] = acc.astype(out_ref.dtype)


def _hw_budget():
    """Generation-aware (tile_gate, vmem_limit_cap, max_tile_rows, num_cores)."""
    cap = 64 << 20                            # conservative default (v7x per-TC)
    try:
        cap = int(pltpu.get_tpu_info().vmem_capacity_bytes)
    except Exception:
        pass
    if cap <= (64 << 20):                     # v7x-class: 64 MiB / TC, 2 TCs / chip
        return (40 << 20), (48 << 20), 512, 2
    return (96 << 20), (100 << 20), 1024, 1   # v5e / v6e: 128 MiB VMEM, 1 TC


def encoder_forward(x, params: EncoderParams, *, batch_tile=None):
    """x: (B, in_dim) -> (B, out_dim); one fused pallas_call over batch tiles."""
    B, in_dim = x.shape
    dims, dims_p = params.dims, params.dims_p
    assert in_dim == dims[0], f"expected in_dim={dims[0]}, got {in_dim}"
    n_layers = len(dims) - 1
    out_dim = dims[-1]
    d_in_p, d_out_p, d_max_p = dims_p[0], dims_p[-1], max(dims_p)
    cdt = params.compute_dtype
    itemsize = jnp.dtype(cdt).itemsize
    out_itemsize = jnp.dtype(x.dtype).itemsize

    tile_gate, vmem_cap, max_tile, num_cores = _hw_budget()

    # Packed params are single-buffered (resident); x/out tiles double-buffer.
    param_bytes = params.w_packed.size * itemsize + params.b_packed.size * 4

    def est_vmem(bt):
        io = 2 * bt * (d_in_p * itemsize + d_out_p * out_itemsize)
        inter = 3 * bt * d_max_p * 4          # f32 accumulators / temporaries
        return io + param_bytes + inter

    # Sub-32-bit dtypes pack along sublanes: match the native packed tile.
    sublane = max(8, 32 // itemsize)

    if batch_tile is None:
        if num_cores >= 2 and B > sublane:
            # v7x: >= 2 grid steps so ("parallel",) shards across both TCs.
            batch_tile = _round_up(pl.cdiv(B, 2), sublane)
        else:
            # Single TensorCore: one big tile if the whole batch fits the gate.
            batch_tile = _round_up(max(B, 1), sublane)
        batch_tile = min(batch_tile, max_tile)
    batch_tile = max(sublane, _round_up(int(batch_tile), sublane))
    while batch_tile > sublane and est_vmem(batch_tile) > tile_gate:
        batch_tile = _round_up(max(batch_tile // 2, sublane), sublane)
    # TODO(synk): layers whose padded weights alone exceed the VMEM gate need
    # K/N weight tiling (reduction grid axis + f32 scratch accumulator) instead
    # of resident full weights; the funnel-shaped Encoder never gets near that.

    grid = (pl.cdiv(B, batch_tile),)          # ragged last block clipped by Pallas

    x_c = jnp.asarray(x, cdt)
    if d_in_p != in_dim:                      # feature-dim pad only; no batch pad
        x_c = jnp.pad(x_c, ((0, 0), (0, d_in_p - in_dim)))

    vmem_limit = int(min(max(int(1.25 * est_vmem(batch_tile)), 16 << 20), vmem_cap))

    def _call(single_buffer_consts):
        if single_buffer_consts:
            const_spec = lambda shape: pl.BlockSpec(
                shape, lambda i: (0, 0), pipeline_mode=pl.Buffered(1))
        else:
            const_spec = lambda shape: pl.BlockSpec(shape, lambda i: (0, 0))
        in_specs = [
            pl.BlockSpec((batch_tile, d_in_p), lambda i: (i, 0)),
            const_spec(params.w_packed.shape),
            const_spec(params.b_packed.shape),
        ]
        out_spec = pl.BlockSpec((batch_tile, d_out_p), lambda i: (i, 0))
        return pl.pallas_call(
            functools.partial(_encoder_kernel, n_layers, dims_p,
                              params.row_offsets),
            out_shape=jax.ShapeDtypeStruct((B, d_out_p), x.dtype),
            grid=grid,
            in_specs=in_specs,
            out_specs=out_spec,
            compiler_params=pltpu.CompilerParams(
                dimension_semantics=("parallel",),
                vmem_limit_bytes=vmem_limit),
        )(x_c, params.w_packed, params.b_packed)

    try:
        out_padded = _call(True)
    except Exception:
        # Fallback for jax versions without BlockSpec pipeline_mode support.
        out_padded = _call(False)

    return out_padded[:, :out_dim]


def encoder_apply(x, weights, biases, *, compute_dtype=None, batch_tile=None):
    """Convenience wrapper: prep + forward (prefer preparing params once)."""
    params = prepare_encoder_params(weights, biases, compute_dtype)
    return encoder_forward(x, params, batch_tile=batch_tile)


def init_encoder_params(key, in_dim, out_dim, layers):
    """Matches the PyTorch Encoder: np.linspace node sizes -> layers-1 Linears,
    nn.Linear default init (uniform +/- 1/sqrt(fan_in))."""
    steps = np.linspace(in_dim, out_dim, layers, endpoint=True).astype(int)
    weights, biases = [], []
    for a, b in zip(steps[:-1], steps[1:]):
        key, kw, kb = jax.random.split(key, 3)
        bound = 1.0 / np.sqrt(a)
        weights.append(jax.random.uniform(kw, (int(b), int(a)), jnp.float32,
                                          minval=-bound, maxval=bound))
        biases.append(jax.random.uniform(kb, (int(b),), jnp.float32,
                                         minval=-bound, maxval=bound))
    return weights, biases


def encoder_reference(x, weights, biases):
    """Pure-JAX reference of the PyTorch forward."""
    h = x
    n = len(weights)
    for i, (w, b) in enumerate(zip(weights, biases)):
        h = h @ w.T + b
        if i < n - 1:
            h = jnp.maximum(h, 0.0)
    return h


if __name__ == "__main__":
    key = jax.random.PRNGKey(0)
    in_dim, out_dim, layers = 32, 8, 4        # steps = [32, 24, 16, 8] -> 3 Linears

    key, kx = jax.random.split(key)
    weights, biases = init_encoder_params(key, in_dim, out_dim, layers)

    # --- default path: bf16 MXU compute, f32 accumulation -------------------
    x = jax.random.normal(kx, (16, in_dim), jnp.float32)
    params = prepare_encoder_params(weights, biases)     # one-time prep, reused
    out = jax.block_until_ready(encoder_forward(x, params))
    ref = encoder_reference(x, weights, biases)
    np.testing.assert_allclose(np.asarray(out), np.asarray(ref),
                               rtol=5e-2, atol=5e-2)

    # --- f32 compute path, ragged last batch block (B=40, tile=16) ----------
    key, kx2 = jax.random.split(key)
    x2 = jax.random.normal(kx2, (40, in_dim), jnp.float32)
    params_f32 = prepare_encoder_params(weights, biases, compute_dtype=jnp.float32)
    out2 = jax.block_until_ready(encoder_forward(x2, params_f32, batch_tile=16))
    ref2 = encoder_reference(x2, weights, biases)
    np.testing.assert_allclose(np.asarray(out2), np.asarray(ref2),
                               rtol=1e-5, atol=1e-5)

    print("KERNEL_OK")
</pallas_src>

<mosaic_0001>
module attributes {stable_mosaic.version = 11 : i64} {
  func.func @_encoder_kernel(%arg0: i32, %arg1: memref<16x128xbf16, #tpu.memory_space<vmem>>, %arg2: memref<384x128xbf16, #tpu.memory_space<vmem>>, %arg3: memref<3x128xf32, #tpu.memory_space<vmem>>, %arg4: memref<16x128xf32, #tpu.memory_space<vmem>>) attributes {dimension_semantics = [#tpu.dimension_semantics<parallel>], iteration_bounds = array<i64: 1>, scalar_prefetch = 0 : i64, scratch_operands = 0 : i64, tpu.core_type = #tpu.core_type<tc>, window_params = [{transform_indices = @transform_0, window_bounds = array<i64: 16, 128>}, {pipeline_mode = #tpu.pipeline_mode<synchronous>, transform_indices = @transform_1, window_bounds = array<i64: 384, 128>}, {pipeline_mode = #tpu.pipeline_mode<synchronous>, transform_indices = @transform_2, window_bounds = array<i64: 3, 128>}, {transform_indices = @transform_3, window_bounds = array<i64: 16, 128>}]} {
    %c0 = arith.constant 0 : index
    %c0_0 = arith.constant 0 : index
    %0 = vector.load %arg1[%c0, %c0_0] : memref<16x128xbf16, #tpu.memory_space<vmem>>, vector<16x128xbf16>
    %c0_1 = arith.constant 0 : index
    %c0_2 = arith.constant 0 : index
    %1 = vector.load %arg2[%c0_1, %c0_2] : memref<384x128xbf16, #tpu.memory_space<vmem>>, vector<128x128xbf16>
    %c0_3 = arith.constant 0 : index
    %c0_4 = arith.constant 0 : index
    %2 = vector.load %arg3[%c0_3, %c0_4] : memref<3x128xf32, #tpu.memory_space<vmem>>, vector<1x128xf32>
    %cst = arith.constant dense<0.000000e+00> : vector<16x128xf32>
    %3 = tpu.matmul %0, %1, %cst {dimension_numbers = #tpu.dot_dimension_numbers<[1], [0], [0], [1], [0, 0, 1, 1], [], []>} : vector<16x128xbf16>, vector<128x128xbf16>, vector<16x128xf32> -> vector<16x128xf32>
    %4 = vector.broadcast %2 : vector<1x128xf32> to vector<16x128xf32>
    %5 = arith.addf %3, %4 : vector<16x128xf32>
    %cst_5 = arith.constant 0.000000e+00 : f32
    %6 = vector.broadcast %cst_5 : f32 to vector<16x128xf32>
    %7 = arith.maximumf %5, %6 : vector<16x128xf32>
    %8 = arith.truncf %7 : vector<16x128xf32> to vector<16x128xbf16>
    %c128 = arith.constant 128 : index
    %c0_6 = arith.constant 0 : index
    %9 = vector.load %arg2[%c128, %c0_6] : memref<384x128xbf16, #tpu.memory_space<vmem>>, vector<128x128xbf16>
    %c1 = arith.constant 1 : index
    %c0_7 = arith.constant 0 : index
    %10 = vector.load %arg3[%c1, %c0_7] : memref<3x128xf32, #tpu.memory_space<vmem>>, vector<1x128xf32>
    %cst_8 = arith.constant dense<0.000000e+00> : vector<16x128xf32>
    %11 = tpu.matmul %8, %9, %cst_8 {dimension_numbers = #tpu.dot_dimension_numbers<[1], [0], [0], [1], [0, 0, 1, 1], [], []>} : vector<16x128xbf16>, vector<128x128xbf16>, vector<16x128xf32> -> vector<16x128xf32>
    %12 = vector.broadcast %10 : vector<1x128xf32> to vector<16x128xf32>
    %13 = arith.addf %11, %12 : vector<16x128xf32>
    %cst_9 = arith.constant 0.000000e+00 : f32
    %14 = vector.broadcast %cst_9 : f32 to vector<16x128xf32>
    %15 = arith.maximumf %13, %14 : vector<16x128xf32>
    %16 = arith.truncf %15 : vector<16x128xf32> to vector<16x128xbf16>
    %c256 = arith.constant 256 : index
    %c0_10 = arith.constant 0 : index
    %17 = vector.load %arg2[%c256, %c0_10] : memref<384x128xbf16, #tpu.memory_space<vmem>>, vector<128x128xbf16>
    %c2 = arith.constant 2 : index
    %c0_11 = arith.constant 0 : index
    %18 = vector.load %arg3[%c2, %c0_11] : memref<3x128xf32, #tpu.memory_space<vmem>>, vector<1x128xf32>
    %cst_12 = arith.constant dense<0.000000e+00> : vector<16x128xf32>
    %19 = tpu.matmul %16, %17, %cst_12 {dimension_numbers = #tpu.dot_dimension_numbers<[1], [0], [0], [1], [0, 0, 1, 1], [], []>} : vector<16x128xbf16>, vector<128x128xbf16>, vector<16x128xf32> -> vector<16x128xf32>
    %20 = vector.broadcast %18 : vector<1x128xf32> to vector<16x128xf32>
    %21 = arith.addf %19, %20 : vector<16x128xf32>
    %c0_13 = arith.constant 0 : index
    %c0_14 = arith.constant 0 : index
    %22 = vector.load %arg4[%c0_13, %c0_14] : memref<16x128xf32, #tpu.memory_space<vmem>>, vector<16x128xf32>
    tpu.vector_store %arg4[%c0_13, %c0_14], %21 {strides = array<i32>} : memref<16x128xf32, #tpu.memory_space<vmem>>, vector<16x128xf32>,
    return
  }
  func.func @transform_0(%arg0: i32) -> (i32, i32) {
    %c0_i32 = arith.constant 0 : i32
    %c0_i32_0 = arith.constant 0 : i32
    return %arg0, %c0_i32 : i32, i32
  }
  func.func @transform_1(%arg0: i32) -> (i32, i32) {
    %c0_i32 = arith.constant 0 : i32
    %c0_i32_0 = arith.constant 0 : i32
    %c0_i32_1 = arith.constant 0 : i32
    return %c0_i32, %c0_i32_0 : i32, i32
  }
  func.func @transform_2(%arg0: i32) -> (i32, i32) {
    %c0_i32 = arith.constant 0 : i32
    %c0_i32_0 = arith.constant 0 : i32
    %c0_i32_1 = arith.constant 0 : i32
    return %c0_i32, %c0_i32_0 : i32, i32
  }
  func.func @transform_3(%arg0: i32) -> (i32, i32) {
    %c0_i32 = arith.constant 0 : i32
    %c0_i32_0 = arith.constant 0 : i32
    return %arg0, %c0_i32 : i32, i32
  }
}

module attributes {stable_mosaic.version = 11 : i64} {
  func.func @_encoder_kernel(%arg0: i32, %arg1: memref<16x128xbf16, #tpu.memory_space<vmem>>, %arg2: memref<384x128xbf16, #tpu.memory_space<vmem>>, %arg3: memref<3x128xf32, #tpu.memory_space<vmem>>, %arg4: memref<16x128xf32, #tpu.memory_space<vmem>>) attributes {dimension_semantics = [#tpu.dimension_semantics<parallel>], iteration_bounds = array<i64: 1>, scalar_prefetch = 0 : i64, scratch_operands = 0 : i64, tpu.core_type = #tpu.core_type<tc>, window_params = [{transform_indices = @transform_0, window_bounds = array<i64: 16, 128>}, {pipeline_mode = #tpu.pipeline_mode<synchronous>, transform_indices = @transform_1, window_bounds = array<i64: 384, 128>}, {pipeline_mode = #tpu.pipeline_mode<synchronous>, transform_indices = @transform_2, window_bounds = array<i64: 3, 128>}, {transform_indices = @transform_3, window_bounds = array<i64: 16, 128>}]} {
    %c0 = arith.constant 0 : index
    %c0_0 = arith.constant 0 : index
    %0 = vector.load %arg1[%c0, %c0_0] : memref<16x128xbf16, #tpu.memory_space<vmem>>, vector<16x128xbf16>
    %c0_1 = arith.constant 0 : index
    %c0_2 = arith.constant 0 : index
    %1 = vector.load %arg2[%c0_1, %c0_2] : memref<384x128xbf16, #tpu.memory_space<vmem>>, vector<128x128xbf16>
    %c0_3 = arith.constant 0 : index
    %c0_4 = arith.constant 0 : index
    %2 = vector.load %arg3[%c0_3, %c0_4] : memref<3x128xf32, #tpu.memory_space<vmem>>, vector<1x128xf32>
    %cst = arith.constant dense<0.000000e+00> : vector<16x128xf32>
    %3 = tpu.matmul %0, %1, %cst {dimension_numbers = #tpu.dot_dimension_numbers<[1], [0], [0], [1], [0, 0, 1, 1], [], []>} : vector<16x128xbf16>, vector<128x128xbf16>, vector<16x128xf32> -> vector<16x128xf32>
    %4 = vector.broadcast %2 : vector<1x128xf32> to vector<16x128xf32>
    %5 = arith.addf %3, %4 : vector<16x128xf32>
    %cst_5 = arith.constant 0.000000e+00 : f32
    %6 = vector.broadcast %cst_5 : f32 to vector<16x128xf32>
    %7 = arith.maximumf %5, %6 : vector<16x128xf32>
    %8 = arith.truncf %7 : vector<16x128xf32> to vector<16x128xbf16>
    %c128 = arith.constant 128 : index
    %c0_6 = arith.constant 0 : index
    %9 = vector.load %arg2[%c128, %c0_6] : memref<384x128xbf16, #tpu.memory_space<vmem>>, vector<128x128xbf16>
    %c1 = arith.constant 1 : index
    %c0_7 = arith.constant 0 : index
    %10 = vector.load %arg3[%c1, %c0_7] : memref<3x128xf32, #tpu.memory_space<vmem>>, vector<1x128xf32>
    %cst_8 = arith.constant dense<0.000000e+00> : vector<16x128xf32>
    %11 = tpu.matmul %8, %9, %cst_8 {dimension_numbers = #tpu.dot_dimension_numbers<[1], [0], [0], [1], [0, 0, 1, 1], [], []>} : vector<16x128xbf16>, vector<128x128xbf16>, vector<16x128xf32> -> vector<16x128xf32>
    %12 = vector.broadcast %10 : vector<1x128xf32> to vector<16x128xf32>
    %13 = arith.addf %11, %12 : vector<16x128xf32>
    %cst_9 = arith.constant 0.000000e+00 : f32
    %14 = vector.broadcast %cst_9 : f32 to vector<16x128xf32>
    %15 = arith.maximumf %13, %14 : vector<16x128xf32>
    %16 = arith.truncf %15 : vector<16x128xf32> to vector<16x128xbf16>
    %c256 = arith.constant 256 : index
    %c0_10 = arith.constant 0 : index
    %17 = vector.load %arg2[%c256, %c0_10] : memref<384x128xbf16, #tpu.memory_space<vmem>>, vector<128x128xbf16>
    %c2 = arith.constant 2 : index
    %c0_11 = arith.constant 0 : index
    %18 = vector.load %arg3[%c2, %c0_11] : memref<3x128xf32, #tpu.memory_space<vmem>>, vector<1x128xf32>
    %cst_12 = arith.constant dense<0.000000e+00> : vector<16x128xf32>
    %19 = tpu.matmul %16, %17, %cst_12 {dimension_numbers = #tpu.dot_dimension_numbers<[1], [0], [0], [1], [0, 0, 1, 1], [], []>} : vector<16x128xbf16>, vector<128x128xbf16>, vector<16x128xf32> -> vector<16x128xf32>
    %20 = vector.broadcast %18 : vector<1x128xf32> to vector<16x128xf32>
    %21 = arith.addf %19, %20 : vector<16x128xf32>
    %c0_13 = arith.constant 0 : index
    %c0_14 = arith.constant 0 : index
    %22 = vector.load %arg4[%c0_13, %c0_14] : memref<16x128xf32, #tpu.memory_space<vmem>>, vector<16x128xf32>
    tpu.vector_store %arg4[%c0_13, %c0_14], %21 {strides = array<i32>} : memref<16x128xf32, #tpu.memory_space<vmem>>, vector<16x128xf32>,
    return
  }
  func.func @transform_0(%arg0: i32) -> (i32, i32) {
    %c0_i32 = arith.constant 0 : i32
    %c0_i32_0 = arith.constant 0 : i32
    return %arg0, %c0_i32 : i32, i32
  }
  func.func @transform_1(%arg0: i32) -> (i32, i32) {
    %c0_i32 = arith.constant 0 : i32
    %c0_i32_0 = arith.constant 0 : i32
    %c0_i32_1 = arith.constant 0 : i32
    return %c0_i32, %c0_i32_0 : i32, i32
  }
  func.func @transform_2(%arg0: i32) -> (i32, i32) {
    %c0_i32 = arith.constant 0 : i32
    %c0_i32_0 = arith.constant 0 : i32
    %c0_i32_1 = arith.constant 0 : i32
    return %c0_i32, %c0_i32_0 : i32, i32
  }
  func.func @transform_3(%arg0: i32) -> (i32, i32) {
    %c0_i32 = arith.constant 0 : i32
    %c0_i32_0 = arith.constant 0 : i32
    return %arg0, %c0_i32 : i32, i32
  }
}

</mosaic_0001>

<bundles_post_ra>
// kernel: tpu_custom_call.1
= control target key start
LH: loop header
LB: loop body
LE: loop exit
PB: predicated region body
PF: predicated region fallthrough
CT: control target
= control target key end

     0   :  { %8 = vsyncpa [#allocation3], 0  ;;  %s727_s0 = inlined_call_operand.hbm [shape: bf16[16,128], index: 0, kind: input, shape index: {}]   ;;  %s728_s1 = inlined_call_operand.hbm [shape: bf16[384,128], index: 1, kind: input, shape index: {}]   ;;  %s729_s2 = inlined_call_operand.hbm [shape: f32[3,128], index: 2, kind: input, shape index: {}]   ;;  %s730_s3 = inlined_call_operand.hbm [shape: f32[16,128], index: 3, kind: output, shape index: {}]  }
   0x1   :  { %9 = vsyncpa [#allocation6], 0 }
   0x2   :  { %10 = vsyncpa [#allocation4], 0  ;;  %s655_s12 = smov [#allocation5]   ;;  %s656_s14 = smov [#allocation2]  }
   0x3   :  { %s28_s13 = sshll.u32 %s655_s12, 4  ;;  %s16_s15 = sshll.u32 %s656_s14, 4  ;;  %s29_s13 = int_to_ptr.vmem [resolvable:$true] %s28_s13  ;;  %s17_s15 = int_to_ptr.vmem [resolvable:$true] %s16_s15 }
   0x4   :  { %s577_s16 = scalar_lea.vmem %s29_s13, 3072  ;;  %p582_p1 = scmp.lt.s32.totalorder %s29_s13, %s29_s13 }
   0x5   :  { %p578_p0 = scmp.ne.s32.totalorder %s29_s13, %s577_s16  ;;  %p583_p2 = scmp.lt.s32.totalorder %s577_s16, %s577_s16 }
   0x7   :  { %p584_p3 = por %p583_p2, %p582_p1 }
   0x9   :  { %p585_p4 = pnand %p584_p3, %p578_p0 }
   0xb   :  { %588 = shalt.err (!%p585_p4)
}
   0xc   :  { %s657_s17 = smov 64   ;;  %s658_s18 = smov 4  }
   0xd   :  { %34 = dma.hbm_to_vmem [thread:$0]  %s728_s1, 3072, %s29_s13, [#allocation6], %s657_s17, %s657_s17, %s658_s18  }
   0xe   :  { %s597_s21 = scalar_lea.vmem %s17_s15, 128  ;;  %p602_p6 = scmp.lt.s32.totalorder %s17_s15, %s17_s15 }
   0xf   :  { %p598_p5 = scmp.ne.s32.totalorder %s17_s15, %s597_s21  ;;  %p603_p7 = scmp.lt.s32.totalorder %s597_s21, %s597_s21 }
  0x11   :  { %p604_p8 = por %p603_p7, %p602_p6 }
  0x13   :  { %p605_p9 = pnand %p604_p8, %p598_p5 }
  0x15   :  { %608 = shalt.err (!%p605_p9)
}
  0x16   :  { %22 = dma.hbm_to_vmem [thread:$0]  %s727_s0, 128, %s17_s15, [#allocation3], %s657_s17, %s657_s17, %s658_s18  }
  0x17   :  { %s659_s24 = smov [#allocation7]  }
  0x18   :  { %s41_s25 = sshll.u32 %s659_s24, 4  ;;  %s42_s25 = int_to_ptr.vmem [resolvable:$true] %s41_s25 }
  0x19   :  { %s617_s26 = scalar_lea.vmem %s42_s25, 64  ;;  %p622_p11 = scmp.lt.s32.totalorder %s42_s25, %s42_s25 }
  0x1a   :  { %p618_p10 = scmp.ne.s32.totalorder %s42_s25, %s617_s26  ;;  %p623_p12 = scmp.lt.s32.totalorder %s617_s26, %s617_s26 }
  0x1c   :  { %p624_p13 = por %p623_p12, %p622_p11 }
  0x1e   :  { %p625_p0 = pnand %p624_p13, %p618_p10 }
  0x20   :  { %628 = shalt.err (!%p625_p0)
}
  0x21   :  { %44 = dma.hbm_to_vmem [thread:$0]  %s729_s2, 64, %s42_s25, [#allocation6]  }
  0x22   :  { %649 = dma.done.wait [#allocation3], 128  }
  0x23   :  { %650 = vsyncadd [#allocation3], 4294967168 }
  0x24   :  { %651 = dma.done.wait [#allocation6], 3136  }
  0x25   :  { %652 = vsyncadd [#allocation6], 4294964160  ;;  %v660_v0 = vmov 0.0   ;;  %vm661_vm0 = vmmov 0   ;;  %v544_v1 = vld [vmem:[#allocation5 + $0x38] sm:$0xff]   ;;  %v545_v2 = vld [vmem:[#allocation5 + $0x30] sm:$0xff]  }
  0x26   :  { %474 = vmatprep.subr.bf16.mxu0 %v660_v0  ;;  %490 = vmatprep.mubr.msk.bf16.mxu0 %vm661_vm0, %v660_v0  ;;  %v546_v3 = vld [vmem:[#allocation5 + $0x28] sm:$0xff]   ;;  %v553_v4 = vld [vmem:[#allocation5 + $0x78] sm:$0xff]   ;;  %v547_v5 = vld [vmem:[#allocation5 + $0x20] sm:$0xff]   ;;  %s662_s0 = smov [#allocation8]  }
  0x27   :  { %494 = vmatprep.subr.bf16.mxu1 %v660_v0  ;;  %510 = vmatprep.mubr.msk.bf16.mxu1 %vm661_vm0, %v660_v0  ;;  %v554_v6 = vld [vmem:[#allocation5 + $0x70] sm:$0xff]   ;;  %v548_v7 = vld [vmem:[#allocation5 + $0x18] sm:$0xff]   ;;  %v555_v8 = vld [vmem:[#allocation5 + $0x68] sm:$0xff]   ;;  %s406_s2 = sshll.u32 %s662_s0, 4  ;;  %s407_s2 = int_to_ptr.vmem [resolvable:$true] %s406_s2 }
  0x28   :  { %475 = vmatpush3.bf16.msra.mxu0 %v544_v1  ;;  %495 = vmatpush3.bf16.msra.mxu1 %v553_v4  ;;  %v549_v9 = vld [vmem:[#allocation5 + $0x10] sm:$0xff]   ;;  %v556_v10 = vld [vmem:[#allocation5 + $0x60] sm:$0xff]   ;;  %v550_v11 = vld [vmem:[#allocation5 + $0x8] sm:$0xff]   ;;  %s629_s28 = scalar_lea.vmem %s407_s2, 256  ;;  %p634_p2 = scmp.lt.s32.totalorder %s407_s2, %s407_s2 }
  0x29   :  { %476 = vmatprep.subr.bf16.mxu0 %v660_v0  ;;  %496 = vmatprep.subr.bf16.mxu1 %v660_v0  ;;  %v557_v12 = vld [vmem:[#allocation5 + $0x58] sm:$0xff]   ;;  %v551_v13 = vld [vmem:[#allocation5] sm:$0xff]   ;;  %v558_v15 = vld [vmem:[#allocation5 + $0x50] sm:$0xff]   ;;  %p630_p1 = scmp.ne.s32.totalorder %s407_s2, %s629_s28  ;;  %p635_p3 = scmp.lt.s32.totalorder %s629_s28, %s629_s28 }
  0x2a   :  { %v552_v14 = vld [vmem:[#allocation2] sm:$0xff]   ;;  %v559_v16 = vld [vmem:[#allocation5 + $0x48] sm:$0xff]   ;;  %v560_v17 = vld [vmem:[#allocation5 + $0x40] sm:$0xff]  }
  0x2b   :  { %v561_v18 = vld [vmem:[#allocation5 + $0xb8] sm:$0xff]   ;;  %v562_v19 = vld [vmem:[#allocation5 + $0xb0] sm:$0xff]   ;;  %v563_v20 = vld [vmem:[#allocation5 + $0xa8] sm:$0xff]   ;;  %p636_p4 = por %p635_p3, %p634_p2 }
  0x2c   :  { %477 = vmatpush3.bf16.msra.mxu0 %v545_v2  ;;  %497 = vmatpush3.bf16.msra.mxu1 %v554_v6  ;;  %v564_v21 = vld [vmem:[#allocation5 + $0xa0] sm:$0xff]   ;;  %v565_v22 = vld [vmem:[#allocation5 + $0x98] sm:$0xff]   ;;  %v566_v33 = vld [vmem:[#allocation5 + $0x90] sm:$0xff]  }
  0x2d   :  { %478 = vmatprep.subr.bf16.mxu0 %v660_v0  ;;  %498 = vmatprep.subr.bf16.mxu1 %v660_v0  ;;  %v419_v23 = vld [vmem:[#allocation7] ss:$0 sm:$0xff]  ;;  %v567_v34 = vld [vmem:[#allocation5 + $0x88] sm:$0xff]   ;;  %v429_v36 = vld [vmem:[#allocation7 + $0x1] ss:$0 sm:$0xff]  ;;  %p637_p5 = pnand %p636_p4, %p630_p1 }
  0x2e   :  { %v568_v35 = vld [vmem:[#allocation5 + $0x80] sm:$0xff]  }
  0x2f   :  { %v438_v46 = vld [vmem:[#allocation7 + $0x2] ss:$0 sm:$0xff] }
  0x30   :  { %479 = vmatpush3.bf16.msra.mxu0 %v546_v3  ;;  %499 = vmatpush3.bf16.msra.mxu1 %v555_v8 }
  0x31   :  { %480 = vmatprep.subr.bf16.mxu0 %v660_v0  ;;  %500 = vmatprep.subr.bf16.mxu1 %v660_v0 }
  0x34   :  { %481 = vmatpush3.bf16.msra.mxu0 %v547_v5  ;;  %501 = vmatpush3.bf16.msra.mxu1 %v556_v10 }
  0x35   :  { %482 = vmatprep.subr.bf16.mxu0 %v660_v0  ;;  %502 = vmatprep.subr.bf16.mxu1 %v660_v0 }
  0x38   :  { %483 = vmatpush3.bf16.msra.mxu0 %v548_v7  ;;  %503 = vmatpush3.bf16.msra.mxu1 %v557_v12 }
  0x39   :  { %484 = vmatprep.subr.bf16.mxu0 %v660_v0  ;;  %504 = vmatprep.subr.bf16.mxu1 %v660_v0 }
  0x3c   :  { %485 = vmatpush3.bf16.msra.mxu0 %v549_v9  ;;  %505 = vmatpush3.bf16.msra.mxu1 %v558_v15 }
  0x3d   :  { %486 = vmatprep.subr.bf16.mxu0 %v660_v0  ;;  %506 = vmatprep.subr.bf16.mxu1 %v660_v0 }
  0x40   :  { %487 = vmatpush3.bf16.msra.mxu0 %v550_v11  ;;  %507 = vmatpush3.bf16.msra.mxu1 %v559_v16 }
  0x41   :  { %488 = vmatprep.subr.bf16.mxu0 %v660_v0  ;;  %508 = vmatprep.subr.bf16.mxu1 %v660_v0 }
  0x44   :  { %489 = vmatpush3.bf16.msra.mxu0 %v551_v13  ;;  %509 = vmatpush3.bf16.msra.mxu1 %v560_v17 }
  0x45   :  { %514 = vmatprep.subr.bf16.mxu0 %v660_v0 }
  0x47   :  { %491 = vmatmul.mubr.bf16.vlgmr.msra.gmra.mxu0 %v552_v14 }
  0x48   :  { %530 = vmatprep.mubr.msk.bf16.mxu0 %vm661_vm0, %v660_v0  ;;  %515 = vmatpush3.bf16.msra.mxu0 %v561_v18 }
  0x49   :  { %516 = vmatprep.subr.bf16.mxu0 %v660_v0 }
  0x4c   :  { %517 = vmatpush3.bf16.msra.mxu0 %v562_v19 }
  0x4d   :  { %518 = vmatprep.subr.bf16.mxu0 %v660_v0 }
  0x50   :  { %519 = vmatpush3.bf16.msra.mxu0 %v563_v20 }
  0x51   :  { %520 = vmatprep.subr.bf16.mxu0 %v660_v0 }
  0x54   :  { %521 = vmatpush3.bf16.msra.mxu0 %v564_v21 }
  0x55   :  { %522 = vmatprep.subr.bf16.mxu0 %v660_v0 }
  0x58   :  { %523 = vmatpush3.bf16.msra.mxu0 %v565_v22 }
  0x59   :  { %524 = vmatprep.subr.bf16.mxu0 %v660_v0 }
  0x5c   :  { %525 = vmatpush3.bf16.msra.mxu0 %v566_v33 }
  0x5d   :  { %526 = vmatprep.subr.bf16.mxu0 %v660_v0 }
  0x60   :  { %527 = vmatpush3.bf16.msra.mxu0 %v567_v34 }
  0x61   :  { %528 = vmatprep.subr.bf16.mxu0 %v660_v0 }
  0x64   :  { %529 = vmatpush3.bf16.msra.mxu0 %v568_v35 }
 0x107   :  { %v166_v24 = vpop.f32.mrf.mxu0 }
 0x108   :  { %v167_v26 = vadd.f32 %v419_v23, %v166_v24 }
 0x109   :  { %v492_v25 = vpop.f32.mrf.mxu0 }
 0x10a   :  { %v173_v30 = vmax.f32 %v167_v26, 0.0 }
 0x10b   :  { %v169_v27 = vpop.f32.mrf.mxu0 }
 0x10c   :  { %v170_v28 = vadd.f32 %v419_v23, %v169_v27 }
 0x10d   :  { %v493_v29 = vpop.f32.mrf.mxu0 }
 0x10e   :  { %v174_v31 = vmax.f32 %v170_v28, 0.0 }
 0x110   :  { %v175_v32 = vpack.c.bf16 %v174_v31, %v173_v30 }
 0x112   :  { %511 = vmatmul.mubr.bf16.vlgmr.msra.gmra.mxu1 %v175_v32 }
 0x1d2   :  { %v279_v37 = vpop.f32.mrf.mxu1 }
 0x1d3   :  { %v280_v39 = vadd.f32 %v429_v36, %v279_v37 }
 0x1d4   :  { %v512_v38 = vpop.f32.mrf.mxu1 }
 0x1d5   :  { %v286_v43 = vmax.f32 %v280_v39, 0.0 }
 0x1d6   :  { %v282_v40 = vpop.f32.mrf.mxu1 }
 0x1d7   :  { %v283_v41 = vadd.f32 %v429_v36, %v282_v40 }
 0x1d8   :  { %v513_v42 = vpop.f32.mrf.mxu1 }
 0x1d9   :  { %v287_v44 = vmax.f32 %v283_v41, 0.0 }
 0x1db   :  { %v288_v45 = vpack.c.bf16 %v287_v44, %v286_v43 }
 0x1dd   :  { %531 = vmatmul.mubr.bf16.vlgmr.msra.gmra.mxu0 %v288_v45 }
 0x29d   :  { %v392_v47 = vpop.f32.mrf.mxu0 }
 0x29e   :  { %v393_v48 = vadd.f32 %v438_v46, %v392_v47 }
 0x29f   :  { %v532_v49 = vpop.f32.mrf.mxu0 }
 0x2a0   :  { %399 = vst [vmem:[#allocation8] sm:$0xff] %v393_v48 }
 0x2a1   :  { %v395_v50 = vpop.f32.mrf.mxu0 }
 0x2a2   :  { %v396_v51 = vadd.f32 %v438_v46, %v395_v50 }
 0x2a3   :  { %v533_v52 = vpop.f32.mrf.mxu0 }
 0x2a4   :  { %400 = vst [vmem:[#allocation8 + $0x8] sm:$0xff] %v396_v51 }
 0x2a5   :  { %640 = shalt.err (!%p637_p5)
}
 0x2a6   :  { %s663_s29 = smov 128   ;;  %s664_s30 = smov 8  }
 0x2a7   :  { %412 = dma.vmem_to_hbm [thread:$0]  %s407_s2, 256, %s730_s3, [#allocation4], %s663_s29, %s663_s29, %s664_s30  }
 0x2a8   :  { %653 = dma.done.wait [#allocation4], 256  }
 0x2a9   :  { %654 = vsyncadd [#allocation4], 4294967040 }
 0x2aa   :  { %416 = vsyncpa [#allocation3], 1 }
 0x2ab   :  { %417 = vsyncpa [#allocation6], 1 }
 0x2ac   :  { %418 = vsyncpa [#allocation4], 1 }

// kernel: tpu_custom_call.1
= control target key start
LH: loop header
LB: loop body
LE: loop exit
PB: predicated region body
PF: predicated region fallthrough
CT: control target
= control target key end

     0   :  { %8 = vsyncpa [#allocation3], 0  ;;  %s727_s0 = inlined_call_operand.hbm [shape: bf16[16,128], index: 0, kind: input, shape index: {}]   ;;  %s728_s1 = inlined_call_operand.hbm [shape: bf16[384,128], index: 1, kind: input, shape index: {}]   ;;  %s729_s2 = inlined_call_operand.hbm [shape: f32[3,128], index: 2, kind: input, shape index: {}]   ;;  %s730_s3 = inlined_call_operand.hbm [shape: f32[16,128], index: 3, kind: output, shape index: {}]  }
   0x1   :  { %9 = vsyncpa [#allocation6], 0 }
   0x2   :  { %10 = vsyncpa [#allocation4], 0  ;;  %s655_s12 = smov [#allocation5]   ;;  %s656_s14 = smov [#allocation2]  }
   0x3   :  { %s28_s13 = sshll.u32 %s655_s12, 4  ;;  %s16_s15 = sshll.u32 %s656_s14, 4  ;;  %s29_s13 = int_to_ptr.vmem [resolvable:$true] %s28_s13  ;;  %s17_s15 = int_to_ptr.vmem [resolvable:$true] %s16_s15 }
   0x4   :  { %s577_s16 = scalar_lea.vmem %s29_s13, 3072  ;;  %p582_p1 = scmp.lt.s32.totalorder %s29_s13, %s29_s13 }
   0x5   :  { %p578_p0 = scmp.ne.s32.totalorder %s29_s13, %s577_s16  ;;  %p583_p2 = scmp.lt.s32.totalorder %s577_s16, %s577_s16 }
   0x7   :  { %p584_p3 = por %p583_p2, %p582_p1 }
   0x9   :  { %p585_p4 = pnand %p584_p3, %p578_p0 }
   0xb   :  { %588 = shalt.err (!%p585_p4)
}
   0xc   :  { %s657_s17 = smov 64   ;;  %s658_s18 = smov 4  }
   0xd   :  { %34 = dma.hbm_to_vmem [thread:$0]  %s728_s1, 3072, %s29_s13, [#allocation6], %s657_s17, %s657_s17, %s658_s18  }
   0xe   :  { %s597_s21 = scalar_lea.vmem %s17_s15, 128  ;;  %p602_p6 = scmp.lt.s32.totalorder %s17_s15, %s17_s15 }
   0xf   :  { %p598_p5 = scmp.ne.s32.totalorder %s17_s15, %s597_s21  ;;  %p603_p7 = scmp.lt.s32.totalorder %s597_s21, %s597_s21 }
  0x11   :  { %p604_p8 = por %p603_p7, %p602_p6 }
  0x13   :  { %p605_p9 = pnand %p604_p8, %p598_p5 }
  0x15   :  { %608 = shalt.err (!%p605_p9)
}
  0x16   :  { %22 = dma.hbm_to_vmem [thread:$0]  %s727_s0, 128, %s17_s15, [#allocation3], %s657_s17, %s657_s17, %s658_s18  }
  0x17   :  { %s659_s24 = smov [#allocation7]  }
  0x18   :  { %s41_s25 = sshll.u32 %s659_s24, 4  ;;  %s42_s25 = int_to_ptr.vmem [resolvable:$true] %s41_s25 }
  0x19   :  { %s617_s26 = scalar_lea.vmem %s42_s25, 64  ;;  %p622_p11 = scmp.lt.s32.totalorder %s42_s25, %s42_s25 }
  0x1a   :  { %p618_p10 = scmp.ne.s32.totalorder %s42_s25, %s617_s26  ;;  %p623_p12 = scmp.lt.s32.totalorder %s617_s26, %s617_s26 }
  0x1c   :  { %p624_p13 = por %p623_p12, %p622_p11 }
  0x1e   :  { %p625_p0 = pnand %p624_p13, %p618_p10 }
  0x20   :  { %628 = shalt.err (!%p625_p0)
}
  0x21   :  { %44 = dma.hbm_to_vmem [thread:$0]  %s729_s2, 64, %s42_s25, [#allocation6]  }
  0x22   :  { %649 = dma.done.wait [#allocation3], 128  }
  0x23   :  { %650 = vsyncadd [#allocation3], 4294967168 }
  0x24   :  { %651 = dma.done.wait [#allocation6], 3136  }
  0x25   :  { %652 = vsyncadd [#allocation6], 4294964160  ;;  %v660_v0 = vmov 0.0   ;;  %vm661_vm0 = vmmov 0   ;;  %v544_v1 = vld [vmem:[#allocation5 + $0x38] sm:$0xff]   ;;  %v545_v2 = vld [vmem:[#allocation5 + $0x30] sm:$0xff]  }
  0x26   :  { %474 = vmatprep.subr.bf16.mxu0 %v660_v0  ;;  %490 = vmatprep.mubr.msk.bf16.mxu0 %vm661_vm0, %v660_v0  ;;  %v546_v3 = vld [vmem:[#allocation5 + $0x28] sm:$0xff]   ;;  %v553_v4 = vld [vmem:[#allocation5 + $0x78] sm:$0xff]   ;;  %v547_v5 = vld [vmem:[#allocation5 + $0x20] sm:$0xff]   ;;  %s662_s0 = smov [#allocation8]  }
  0x27   :  { %494 = vmatprep.subr.bf16.mxu1 %v660_v0  ;;  %510 = vmatprep.mubr.msk.bf16.mxu1 %vm661_vm0, %v660_v0  ;;  %v554_v6 = vld [vmem:[#allocation5 + $0x70] sm:$0xff]   ;;  %v548_v7 = vld [vmem:[#allocation5 + $0x18] sm:$0xff]   ;;  %v555_v8 = vld [vmem:[#allocation5 + $0x68] sm:$0xff]   ;;  %s406_s2 = sshll.u32 %s662_s0, 4  ;;  %s407_s2 = int_to_ptr.vmem [resolvable:$true] %s406_s2 }
  0x28   :  { %475 = vmatpush3.bf16.msra.mxu0 %v544_v1  ;;  %495 = vmatpush3.bf16.msra.mxu1 %v553_v4  ;;  %v549_v9 = vld [vmem:[#allocation5 + $0x10] sm:$0xff]   ;;  %v556_v10 = vld [vmem:[#allocation5 + $0x60] sm:$0xff]   ;;  %v550_v11 = vld [vmem:[#allocation5 + $0x8] sm:$0xff]   ;;  %s629_s28 = scalar_lea.vmem %s407_s2, 256  ;;  %p634_p2 = scmp.lt.s32.totalorder %s407_s2, %s407_s2 }
  0x29   :  { %476 = vmatprep.subr.bf16.mxu0 %v660_v0  ;;  %496 = vmatprep.subr.bf16.mxu1 %v660_v0  ;;  %v557_v12 = vld [vmem:[#allocation5 + $0x58] sm:$0xff]   ;;  %v551_v13 = vld [vmem:[#allocation5] sm:$0xff]   ;;  %v558_v15 = vld [vmem:[#allocation5 + $0x50] sm:$0xff]   ;;  %p630_p1 = scmp.ne.s32.totalorder %s407_s2, %s629_s28  ;;  %p635_p3 = scmp.lt.s32.totalorder %s629_s28, %s629_s28 }
  0x2a   :  { %v552_v14 = vld [vmem:[#allocation2] sm:$0xff]   ;;  %v559_v16 = vld [vmem:[#allocation5 + $0x48] sm:$0xff]   ;;  %v560_v17 = vld [vmem:[#allocation5 + $0x40] sm:$0xff]  }
  0x2b   :  { %v561_v18 = vld [vmem:[#allocation5 + $0xb8] sm:$0xff]   ;;  %v562_v19 = vld [vmem:[#allocation5 + $0xb0] sm:$0xff]   ;;  %v563_v20 = vld [vmem:[#allocation5 + $0xa8] sm:$0xff]   ;;  %p636_p4 = por %p635_p3, %p634_p2 }
  0x2c   :  { %477 = vmatpush3.bf16.msra.mxu0 %v545_v2  ;;  %497 = vmatpush3.bf16.msra.mxu1 %v554_v6  ;;  %v564_v21 = vld [vmem:[#allocation5 + $0xa0] sm:$0xff]   ;;  %v565_v22 = vld [vmem:[#allocation5 + $0x98] sm:$0xff]   ;;  %v566_v33 = vld [vmem:[#allocation5 + $0x90] sm:$0xff]  }
  0x2d   :  { %478 = vmatprep.subr.bf16.mxu0 %v660_v0  ;;  %498 = vmatprep.subr.bf16.mxu1 %v660_v0  ;;  %v419_v23 = vld [vmem:[#allocation7] ss:$0 sm:$0xff]  ;;  %v567_v34 = vld [vmem:[#allocation5 + $0x88] sm:$0xff]   ;;  %v429_v36 = vld [vmem:[#allocation7 + $0x1] ss:$0 sm:$0xff]  ;;  %p637_p5 = pnand %p636_p4, %p630_p1 }
  0x2e   :  { %v568_v35 = vld [vmem:[#allocation5 + $0x80] sm:$0xff]  }
  0x2f   :  { %v438_v46 = vld [vmem:[#allocation7 + $0x2] ss:$0 sm:$0xff] }
  0x30   :  { %479 = vmatpush3.bf16.msra.mxu0 %v546_v3  ;;  %499 = vmatpush3.bf16.msra.mxu1 %v555_v8 }
  0x31   :  { %480 = vmatprep.subr.bf16.mxu0 %v660_v0  ;;  %500 = vmatprep.subr.bf16.mxu1 %v660_v0 }
  0x34   :  { %481 = vmatpush3.bf16.msra.mxu0 %v547_v5  ;;  %501 = vmatpush3.bf16.msra.mxu1 %v556_v10 }
  0x35   :  { %482 = vmatprep.subr.bf16.mxu0 %v660_v0  ;;  %502 = vmatprep.subr.bf16.mxu1 %v660_v0 }
  0x38   :  { %483 = vmatpush3.bf16.msra.mxu0 %v548_v7  ;;  %503 = vmatpush3.bf16.msra.mxu1 %v557_v12 }
  0x39   :  { %484 = vmatprep.subr.bf16.mxu0 %v660_v0  ;;  %504 = vmatprep.subr.bf16.mxu1 %v660_v0 }
  0x3c   :  { %485 = vmatpush3.bf16.msra.mxu0 %v549_v9  ;;  %505 = vmatpush3.bf16.msra.mxu1 %v558_v15 }
  0x3d   :  { %486 = vmatprep.subr.bf16.mxu0 %v660_v0  ;;  %506 = vmatprep.subr.bf16.mxu1 %v660_v0 }
  0x40   :  { %487 = vmatpush3.bf16.msra.mxu0 %v550_v11  ;;  %507 = vmatpush3.bf16.msra.mxu1 %v559_v16 }
  0x41   :  { %488 = vmatprep.subr.bf16.mxu0 %v660_v0  ;;  %508 = vmatprep.subr.bf16.mxu1 %v660_v0 }
  0x44   :  { %489 = vmatpush3.bf16.msra.mxu0 %v551_v13  ;;  %509 = vmatpush3.bf16.msra.mxu1 %v560_v17 }
  0x45   :  { %514 = vmatprep.subr.bf16.mxu0 %v660_v0 }
  0x47   :  { %491 = vmatmul.mubr.bf16.vlgmr.msra.gmra.mxu0 %v552_v14 }
  0x48   :  { %530 = vmatprep.mubr.msk.bf16.mxu0 %vm661_vm0, %v660_v0  ;;  %515 = vmatpush3.bf16.msra.mxu0 %v561_v18 }
  0x49   :  { %516 = vmatprep.subr.bf16.mxu0 %v660_v0 }
  0x4c   :  { %517 = vmatpush3.bf16.msra.mxu0 %v562_v19 }
  0x4d   :  { %518 = vmatprep.subr.bf16.mxu0 %v660_v0 }
  0x50   :  { %519 = vmatpush3.bf16.msra.mxu0 %v563_v20 }
  0x51   :  { %520 = vmatprep.subr.bf16.mxu0 %v660_v0 }
  0x54   :  { %521 = vmatpush3.bf16.msra.mxu0 %v564_v21 }
  0x55   :  { %522 = vmatprep.subr.bf16.mxu0 %v660_v0 }
  0x58   :  { %523 = vmatpush3.bf16.msra.mxu0 %v565_v22 }
  0x59   :  { %524 = vmatprep.subr.bf16.mxu0 %v660_v0 }
  0x5c   :  { %525 = vmatpush3.bf16.msra.mxu0 %v566_v33 }
  0x5d   :  { %526 = vmatprep.subr.bf16.mxu0 %v660_v0 }
  0x60   :  { %527 = vmatpush3.bf16.msra.mxu0 %v567_v34 }
  0x61   :  { %528 = vmatprep.subr.bf16.mxu0 %v660_v0 }
  0x64   :  { %529 = vmatpush3.bf16.msra.mxu0 %v568_v35 }
 0x107   :  { %v166_v24 = vpop.f32.mrf.mxu0 }
 0x108   :  { %v167_v26 = vadd.f32 %v419_v23, %v166_v24 }
 0x109   :  { %v492_v25 = vpop.f32.mrf.mxu0 }
 0x10a   :  { %v173_v30 = vmax.f32 %v167_v26, 0.0 }
 0x10b   :  { %v169_v27 = vpop.f32.mrf.mxu0 }
 0x10c   :  { %v170_v28 = vadd.f32 %v419_v23, %v169_v27 }
 0x10d   :  { %v493_v29 = vpop.f32.mrf.mxu0 }
 0x10e   :  { %v174_v31 = vmax.f32 %v170_v28, 0.0 }
 0x110   :  { %v175_v32 = vpack.c.bf16 %v174_v31, %v173_v30 }
 0x112   :  { %511 = vmatmul.mubr.bf16.vlgmr.msra.gmra.mxu1 %v175_v32 }
 0x1d2   :  { %v279_v37 = vpop.f32.mrf.mxu1 }
 0x1d3   :  { %v280_v39 = vadd.f32 %v429_v36, %v279_v37 }
 0x1d4   :  { %v512_v38 = vpop.f32.mrf.mxu1 }
 0x1d5   :  { %v286_v43 = vmax.f32 %v280_v39, 0.0 }
 0x1d6   :  { %v282_v40 = vpop.f32.mrf.mxu1 }
 0x1d7   :  { %v283_v41 = vadd.f32 %v429_v36, %v282_v40 }
 0x1d8   :  { %v513_v42 = vpop.f32.mrf.mxu1 }
 0x1d9   :  { %v287_v44 = vmax.f32 %v283_v41, 0.0 }
 0x1db   :  { %v288_v45 = vpack.c.bf16 %v287_v44, %v286_v43 }
 0x1dd   :  { %531 = vmatmul.mubr.bf16.vlgmr.msra.gmra.mxu0 %v288_v45 }
 0x29d   :  { %v392_v47 = vpop.f32.mrf.mxu0 }
 0x29e   :  { %v393_v48 = vadd.f32 %v438_v46, %v392_v47 }
 0x29f   :  { %v532_v49 = vpop.f32.mrf.mxu0 }
 0x2a0   :  { %399 = vst [vmem:[#allocation8] sm:$0xff] %v393_v48 }
 0x2a1   :  { %v395_v50 = vpop.f32.mrf.mxu0 }
 0x2a2   :  { %v396_v51 = vadd.f32 %v438_v46, %v395_v50 }
 0x2a3   :  { %v533_v52 = vpop.f32.mrf.mxu0 }
 0x2a4   :  { %400 = vst [vmem:[#allocation8 + $0x8] sm:$0xff] %v396_v51 }
 0x2a5   :  { %640 = shalt.err (!%p637_p5)
}
 0x2a6   :  { %s663_s29 = smov 128   ;;  %s664_s30 = smov 8  }
 0x2a7   :  { %412 = dma.vmem_to_hbm [thread:$0]  %s407_s2, 256, %s730_s3, [#allocation4], %s663_s29, %s663_s29, %s664_s30  }
 0x2a8   :  { %653 = dma.done.wait [#allocation4], 256  }
 0x2a9   :  { %654 = vsyncadd [#allocation4], 4294967040 }
 0x2aa   :  { %416 = vsyncpa [#allocation3], 1 }
 0x2ab   :  { %417 = vsyncpa [#allocation6], 1 }
 0x2ac   :  { %418 = vsyncpa [#allocation4], 1 }

</bundles_post_ra>
